<compile_context>
chip_gen: v6e
topology: v6e:2x2x1
jax: 0.10.0
libtpu: 0.0.40
codegen_flags: <defaults>
</compile_context>

<pallas_src>
import functools

import jax
import jax.numpy as jnp
from jax.experimental import pallas as pl
from jax.experimental.pallas import tpu as pltpu


def _mbstd_tiled_kernel(x_ref, o_ref, ssum_ref, *, inv_chw, eps, num_in_tiles):
    """Fused single-pass tiled reduction + passthrough.

    x_ref : (N, T) input feature tile (storage dtype).
    o_ref : (N, T) output tile. For j < num_in_tiles it is the passthrough
            tile; for j >= num_in_tiles it is a trailing (partially masked)
            block holding the broadcast stddev channel.
    ssum_ref : SMEM f32 scalar accumulator carried across grid steps.
    """
    j = pl.program_id(0)

    @pl.when(j == 0)
    def _init():
        ssum_ref[0] = jnp.float32(0.0)

    @pl.when(j < num_in_tiles)
    def _accumulate_and_passthrough():
        x = x_ref[...]
        # Passthrough stays in the storage dtype (no f32 round trip / copy).
        o_ref[...] = x
        # Batch statistics in f32 (two-pass form, matching torch numerics).
        xf = x.astype(jnp.float32)
        mean = jnp.mean(xf, axis=0, keepdims=True)
        var = jnp.mean(jnp.square(xf - mean), axis=0, keepdims=True) + eps
        # sqrt -> EUP, lane-sum -> XLU: both off the DMA critical path.
        ssum_ref[0] += jnp.sum(jnp.sqrt(var))

    @pl.when(j >= num_in_tiles)
    def _write_stddev_channel():
        # Divide by the exact element count (CHW), never by padded tile sizes.
        s = (ssum_ref[0] * inv_chw).astype(o_ref.dtype)
        o_ref[...] = jnp.broadcast_to(s, o_ref.shape)


def _mbstd_single_block_kernel(x_ref, o_ref, *, chw, hw, eps):
    """Fallback: whole problem in one VMEM block. Used only when C*H*W is not
    a multiple of 128 (no lane-aligned feature tiling exists)."""
    x = x_ref[...]
    xf = x.astype(jnp.float32)
    mean = jnp.mean(xf, axis=0, keepdims=True)
    var = jnp.mean(jnp.square(xf - mean), axis=0, keepdims=True) + eps
    s = jnp.mean(jnp.sqrt(var)).astype(o_ref.dtype)
    o_ref[:, :chw] = x
    o_ref[:, chw:] = jnp.broadcast_to(s, (x.shape[0], hw))


def _choose_feature_tile(n, chw, itemsize):
    """Pick T | CHW with T % 128 == 0 (lane-aligned, no partial data tiles),
    sized near ~2 MiB per (N, T) buffer so double-buffered in+out tiles fit
    comfortably in VMEM on every chip while amortizing per-step overhead."""
    if chw % 128 != 0:
        return None
    divisors = set()
    i = 1
    while i * i <= chw:
        if chw % i == 0:
            for d in (i, chw // i):
                if d % 128 == 0:
                    divisors.add(d)
        i += 1
    if not divisors:
        return None
    divisors = sorted(divisors)
    budget_bytes = 2 * 2**20  # per single (N, T) buffer
    best = divisors[0]
    for d in divisors:
        if n * d * itemsize <= budget_bytes:
            best = d
    return best


def minibatch_stddev(x, eps=1e-8):
    """x: (N, C, H, W) -> (N, C+1, H, W), matching MinibatchStddev.forward."""
    n, c, h, w = x.shape
    hw = h * w
    chw = c * hw
    itemsize = jnp.dtype(x.dtype).itemsize
    x2d = x.reshape(n, chw)
    out_shape = jax.ShapeDtypeStruct((n, chw + hw), x.dtype)

    tile = _choose_feature_tile(n, chw, itemsize)
    if tile is None:
        # TODO(synk): C*H*W not a multiple of 128 -> no lane-aligned tiling;
        # fall back to a single full-array block (must fit VMEM).
        out2d = pl.pallas_call(
            functools.partial(_mbstd_single_block_kernel,
                              chw=chw, hw=hw, eps=float(eps)),
            out_shape=out_shape,
        )(x2d)
        return out2d.reshape(n, c + 1, h, w)

    num_in_tiles = chw // tile
    # Trailing steps cover the extra (N, H*W) stddev channel (>=1 block).
    num_std_tiles = pl.cdiv(hw, tile)
    grid = (num_in_tiles + num_std_tiles,)

    # Explicit VMEM budget: double-buffered in + out tiles plus f32 temporaries,
    # floored at 16 MiB, capped well below v7x's 64 MiB physical VMEM.
    tile_bytes = n * tile * itemsize
    tile_bytes_f32 = n * tile * 4
    vmem_limit = int(min(48 * 2**20,
                         max(16 * 2**20, 4 * tile_bytes + 4 * tile_bytes_f32)))

    kernel = functools.partial(
        _mbstd_tiled_kernel,
        inv_chw=1.0 / float(chw),
        eps=float(eps),
        num_in_tiles=num_in_tiles,
    )

    out2d = pl.pallas_call(
        kernel,
        out_shape=out_shape,
        grid=grid,
        in_specs=[
            # Clamp the block index on trailing steps: same index as the last
            # data step, so the pipeline skips the redundant input DMA.
            pl.BlockSpec((n, tile),
                         lambda j: (0, jnp.minimum(j, num_in_tiles - 1))),
        ],
        out_specs=pl.BlockSpec((n, tile), lambda j: (0, j)),
        scratch_shapes=[pltpu.SMEM((1,), jnp.float32)],
        compiler_params=pltpu.CompilerParams(
            # Carried scalar accumulator -> sequential grid axis.
            dimension_semantics=("arbitrary",),
            vmem_limit_bytes=vmem_limit,
        ),
    )(x2d)

    return out2d.reshape(n, c + 1, h, w)


def _reference(x, eps=1e-8):
    mean = jnp.mean(x, axis=0, keepdims=True)
    diff = jnp.square(x - mean)
    diff = jnp.mean(diff, axis=0, keepdims=True) + eps
    stddev = jnp.sqrt(diff)
    stddev_mean = jnp.mean(stddev)
    nb, _, h, w = x.shape
    y = jnp.tile(stddev_mean, (nb, 1, h, w))
    return jnp.concatenate([x, y], axis=1)


if __name__ == "__main__":
    key = jax.random.PRNGKey(0)
    x = jax.random.normal(key, (2, 4, 16, 16), dtype=jnp.float32)

    out = jax.block_until_ready(minibatch_stddev(x))
    ref = _reference(x)

    assert out.shape == (2, 5, 16, 16), out.shape
    assert jnp.allclose(out, ref, atol=1e-6, rtol=1e-6), "mismatch vs reference"

    print("KERNEL_OK")
</pallas_src>

<mosaic_0001>
module attributes {stable_mosaic.version = 11 : i64} {
  func.func @_mbstd_tiled_kernel(%arg0: i32, %arg1: memref<2x1024xf32, #tpu.memory_space<vmem>>, %arg2: memref<2x1024xf32, #tpu.memory_space<vmem>>, %arg3: memref<1xf32, #tpu.memory_space<smem>>) attributes {dimension_semantics = [#tpu.dimension_semantics<arbitrary>], iteration_bounds = array<i64: 2>, scalar_prefetch = 0 : i64, scratch_operands = 1 : i64, tpu.core_type = #tpu.core_type<tc>, window_params = [{transform_indices = @transform_0, window_bounds = array<i64: 2, 1024>}, {transform_indices = @transform_1, window_bounds = array<i64: 2, 1024>}]} {
    %c0_i32 = arith.constant 0 : i32
    %0 = arith.cmpi eq, %arg0, %c0_i32 : i32
    %1 = arith.extui %0 : i1 to i32
    %c0_i32_0 = arith.constant 0 : i32
    %2 = arith.cmpi ne, %1, %c0_i32_0 : i32
    scf.if %2 {
      %cst = arith.constant 0.000000e+00 : f32
      %c0 = arith.constant 0 : index
      %9 = memref.load %arg3[%c0] : memref<1xf32, #tpu.memory_space<smem>>
      memref.store %cst, %arg3[%c0] : memref<1xf32, #tpu.memory_space<smem>>
    } else {
    }
    %c1_i32 = arith.constant 1 : i32
    %3 = arith.cmpi slt, %arg0, %c1_i32 : i32
    %4 = arith.extui %3 : i1 to i32
    %c0_i32_1 = arith.constant 0 : i32
    %5 = arith.cmpi ne, %4, %c0_i32_1 : i32
    scf.if %5 {
      %c0 = arith.constant 0 : index
      %c0_4 = arith.constant 0 : index
      %9 = vector.load %arg1[%c0, %c0_4] : memref<2x1024xf32, #tpu.memory_space<vmem>>, vector<2x1024xf32>
      %c0_5 = arith.constant 0 : index
      %c0_6 = arith.constant 0 : index
      %10 = vector.load %arg2[%c0_5, %c0_6] : memref<2x1024xf32, #tpu.memory_space<vmem>>, vector<2x1024xf32>
      tpu.vector_store %arg2[%c0_5, %c0_6], %9 {strides = array<i32>} : memref<2x1024xf32, #tpu.memory_space<vmem>>, vector<2x1024xf32>,
      %cst = arith.constant dense<0.000000e+00> : vector<1024xf32>
      %11 = vector.multi_reduction <add>, %9, %cst [0] : vector<2x1024xf32> to vector<1024xf32>
      %12 = vector.shape_cast %11 : vector<1024xf32> to vector<1x1024xf32>
      %cst_7 = arith.constant 2.000000e+00 : f32
      %13 = vector.broadcast %cst_7 : f32 to vector<1x1024xf32>
      %14 = arith.divf %12, %13 : vector<1x1024xf32>
      %15 = vector.broadcast %14 : vector<1x1024xf32> to vector<2x1024xf32>
      %16 = arith.subf %9, %15 : vector<2x1024xf32>
      %17 = arith.mulf %16, %16 : vector<2x1024xf32>
      %cst_8 = arith.constant dense<0.000000e+00> : vector<1024xf32>
      %18 = vector.multi_reduction <add>, %17, %cst_8 [0] : vector<2x1024xf32> to vector<1024xf32>
      %19 = vector.shape_cast %18 : vector<1024xf32> to vector<1x1024xf32>
      %cst_9 = arith.constant 2.000000e+00 : f32
      %20 = vector.broadcast %cst_9 : f32 to vector<1x1024xf32>
      %21 = arith.divf %19, %20 : vector<1x1024xf32>
      %cst_10 = arith.constant 9.99999993E-9 : f32
      %22 = vector.broadcast %cst_10 : f32 to vector<1x1024xf32>
      %23 = arith.addf %21, %22 : vector<1x1024xf32>
      %c0_11 = arith.constant 0 : index
      %24 = memref.load %arg3[%c0_11] : memref<1xf32, #tpu.memory_space<smem>>
      %25 = math.sqrt %23 : vector<1x1024xf32>
      %26 = vector.shape_cast %25 : vector<1x1024xf32> to vector<1x1x1024xf32>
      %cst_12 = arith.constant dense<0.000000e+00> : vector<1xf32>
      %27 = vector.multi_reduction <add>, %26, %cst_12 [1, 2] : vector<1x1x1024xf32> to vector<1xf32>
      %28 = vector.shape_cast %27 : vector<1xf32> to vector<1x1x1xf32>
      %29 = vector.extract %28[0, 0, 0] : f32 from vector<1x1x1xf32>
      %30 = arith.addf %24, %29 : f32
      %c0_13 = arith.constant 0 : index
      %31 = memref.load %arg3[%c0_13] : memref<1xf32, #tpu.memory_space<smem>>
      memref.store %30, %arg3[%c0_13] : memref<1xf32, #tpu.memory_space<smem>>
    } else {
    }
    %c1_i32_2 = arith.constant 1 : i32
    %6 = arith.cmpi sge, %arg0, %c1_i32_2 : i32
    %7 = arith.extui %6 : i1 to i32
    %c0_i32_3 = arith.constant 0 : i32
    %8 = arith.cmpi ne, %7, %c0_i32_3 : i32
    scf.if %8 {
      %c0 = arith.constant 0 : index
      %9 = memref.load %arg3[%c0] : memref<1xf32, #tpu.memory_space<smem>>
      %cst = arith.constant 9.765625E-4 : f32
      %10 = arith.mulf %9, %cst : f32
      %11 = vector.broadcast %10 : f32 to vector<2x1024xf32>
      %c0_4 = arith.constant 0 : index
      %c0_5 = arith.constant 0 : index
      %12 = vector.load %arg2[%c0_4, %c0_5] : memref<2x1024xf32, #tpu.memory_space<vmem>>, vector<2x1024xf32>
      tpu.vector_store %arg2[%c0_4, %c0_5], %11 {strides = array<i32>} : memref<2x1024xf32, #tpu.memory_space<vmem>>, vector<2x1024xf32>,
    } else {
    }
    return
  }
  func.func @transform_0(%arg0: i32) -> (i32, i32) {
    %c0_i32 = arith.constant 0 : i32
    %0 = arith.minsi %arg0, %c0_i32 : i32
    %c0_i32_0 = arith.constant 0 : i32
    %c0_i32_1 = arith.constant 0 : i32
    return %c0_i32_0, %0 : i32, i32
  }
  func.func @transform_1(%arg0: i32) -> (i32, i32) {
    %c0_i32 = arith.constant 0 : i32
    %c0_i32_0 = arith.constant 0 : i32
    return %c0_i32, %arg0 : i32, i32
  }
}

</mosaic_0001>

<bundles_post_ra>
// kernel: tpu_custom_call.1
= control target key start
LH: loop header
LB: loop body
LE: loop exit
PB: predicated region body
PF: predicated region fallthrough
CT: control target
= control target key end

     0   :  { %6 = vsyncpa [#allocation4], 0  ;;  %s1173_s0 = inlined_call_operand.hbm [shape: f32[2,1024], index: 0, kind: input, shape index: {}]   ;;  %s1174_s1 = inlined_call_operand.hbm [shape: f32[2,1280], index: 1, kind: output, shape index: {}]  }
   0x1   :  { %8 = vsyncpa [#allocation4 + $0x1], 0 }
   0x2   :  { %9 = vsyncpa [#allocation5], 0 }
   0x3   :  { %11 = vsyncpa [#allocation5 + $0x1], 0  ;;  %s869_s6 = smov 0   ;;  %s871_s7 = smov 0  }
   0x4   :  { %s873_s8 = smov 0   ;;  %s875_s9 = smov 0  }
   0x5   :  { %s877_s10 = smov 0   ;;  %s879_s11 = smov 0  }
   0x6   :  { %s881_s12 = smov 0  }
   0x7 LB: > { %s903_s13 = sadd.s32 4294967295, %s853_s12   ;;  %s620_s14 = sadd.s32 4294967294, %s853_s12   ;;  %s853_s12 = sphi %s881_s12, %s1195_s12   ;;  %s849_s11 = sphi %s879_s11, %s1194_s11   ;;  %s845_s10 = sphi %s877_s10, %s1193_s10   ;;  %s841_s9 = sphi %s875_s9, %s1192_s9   ;;  %s837_s8 = sphi %s873_s8, %s1191_s8   ;;  %s833_s7 = sphi %s871_s7, %s1190_s7   ;;  %s829_s6 = sphi %s869_s6, %s1189_s6  }
   0x8   : > { %s907_s15 = sadd.s32 1, %s853_s12   ;;  %p21_p0 = scmp.lt.s32.totalorder %s853_s12, 0 }
   0x9   : > { %p23_p1 = scmp.lt.s32.totalorder %s907_s15, 0  ;;  %s28_s16 = sadd.s32 1, %s849_s11 }
   0xa   : > { %s22_s17 = scalar_select %p21_p0, %s853_s12, 0 }
   0xb   : > { %s24_s18 = scalar_select %p23_p1, %s907_s15, 0 }
   0xc   : > { %p35_p2 = scmp.ne.s32.totalorder %s849_s11, %s845_s10  ;;  %p36_p3 = scmp.eq.s32.totalorder %s853_s12, 0 }
   0xd   : > { %s25_s19 = ssub.s32 %s22_s17, %s24_s18  ;;  %p41_p4 = scmp.ne.s32.totalorder %s845_s10, %s841_s9 }
   0xe   : > { %p26_p5 = scmp.eq.s32.totalorder %s25_s19, 0  ;;  %p918_p6 = por %p36_p3, %p35_p2 }
   0xf   : > { %p1175_p7 = scmp.eq.s32.totalorder %s903_s13, 0  ;;  %s51_s21 = ssub.s32 %s853_s12, %s907_s15 }
  0x10   : > { %s926_s22 = scalar_select %p26_p5, %s849_s11, %s28_s16  }
  0x11   : > { %p930_p8 = por %p1175_p7, %p41_p4  ;;  %p52_p9 = scmp.eq.s32.totalorder %s51_s21, 0 }
  0x12   : > { %s54_s24 = sadd.s32 1, %s837_s8  ;;  %p64_p10 = scmp.ne.s32.totalorder %s837_s8, %s833_s7 }
  0x13   : > { %s1178_s23 = scalar_select %p930_p8, 1, 0 }
  0x14   : > { %s938_s25 = scalar_select %p52_p9, %s837_s8, %s54_s24  }
  0x15   : > { %p65_p11 = scmp.eq.s32.totalorder %s903_s13, 1  ;;  %p70_p12 = scmp.ne.s32.totalorder %s833_s7, %s829_s6 }
  0x16   : > { %p71_p13 = scmp.eq.s32.totalorder %s620_s14, 1  ;;  %p658_p2 = scmp.lt.s32.totalorder %s853_s12, 2 }
  0x17   : > { %p944_p1 = por %p65_p11, %p64_p10  ;;  %s91_s28 = sand.u32 1, %s849_s11  }
  0x18   : > { %p949_p3 = por %p71_p13, %p70_p12  ;;  %s623_s29 = sshll.u32 %s91_s28, 4 }
  0x19   : > { %s1179_s26 = scalar_select %p944_p1, 1, 0 }
  0x1a   : > { %s1180_s27 = scalar_select %p949_p3, 1, 0 }
  0x1b   : > { %s641_s30 = sshll.u32 %s22_s17, 8  ;;  %s95_s5 = scalar_lea.vmem [#allocation3], %s623_s29 }
  0x1c   : > { %s957_s4 = scalar_lea.hbm %s1173_s0, %s641_s30  ;;  %s105_s9 = sshll.u32 %s95_s5, 4  ;;  %s959_s9 = int_to_ptr.vmem [resolvable:$true] %s105_s9 }
  0x1d   : > { %p963_p4 = pnand %p658_p2, %p918_p6  ;;  %s92_s16 = scalar_lea.sflag [#allocation4], %s91_s28 }
  0x1e   : > { %s737_s17 = scalar_lea.hbm %s957_s4, 256  ;;  %s742_s21 = scalar_lea.hbm %s1173_s0, 256 }
  0x1f   : > { %p738_p10 = scmp.ne.s32.totalorder %s957_s4, %s737_s17  ;;  %p739_p11 = pneg %p963_p4 }
  0x20   : > { %p743_p6 = scmp.lt.s32.totalorder %s957_s4, %s1173_s0  ;;  %p744_p2 = scmp.lt.s32.totalorder %s742_s21, %s737_s17 }
  0x21   : > { %p740_p12 = pnand %p739_p11, %p738_p10 }
  0x22   : > { %p745_p0 = por %p744_p2, %p743_p6 }
  0x23   : > { %p741_p13 = pneg %p740_p12 }
  0x25   : > { %p746_p7 = pnand %p745_p0, %p741_p13 }
  0x27   : > { %749 = shalt.err (!%p746_p7)
}
  0x28   : > { %s750_s28 = scalar_lea.vmem %s959_s9, 256  ;;  %s855_s29 = smov [#allocation3]  }
  0x29   : > { %p751_p5 = scmp.ne.s32.totalorder %s959_s9, %s750_s28  ;;  %s755_s30 = sshll.u32 %s855_s29, 4  ;;  %s756_s30 = int_to_ptr.vmem [resolvable:$false] %s755_s30 }
  0x2a   : > { %s757_s2 = scalar_lea.vmem %s756_s30, 512  ;;  %p758_p12 = scmp.lt.s32.totalorder %s959_s9, %s756_s30 }
  0x2b   : > { %p753_p9 = pnand %p751_p5, %p739_p11  ;;  %p759_p3 = scmp.lt.s32.totalorder %s757_s2, %s750_s28 }
  0x2d   : > { %p754_p10 = pneg %p753_p9  ;;  %p760_p1 = por %p759_p3, %p758_p12 }
  0x2f   : > { %p761_p8 = pnand %p760_p1, %p754_p10 }
  0x31   : > { %764 = shalt.err (!%p761_p8)
}
  0x32   : > { %653 = dma.hbm_to_vmem [thread:$0]  (!%p963_p4), %s957_s4, 256, %s959_s9, %s92_s16  }
  0x33   : > { %p1182_p7 = scmp.lt.s32.totalorder %s853_s12, 3  ;;  %p1183_p0 = scmp.ge.s32.totalorder %s853_s12, 1 }
  0x35   : > { %p111_p5 = pnand %p1183_p0, %p1182_p7 }
  0x36   : > { %s116_s3 = sand.u32 (!%p111_p5), 1, %s845_s10   ;;  %p1184_p3 = scmp.ne.s32.totalorder (!%p111_p5), %s1178_s23, 0 }
  0x37   : > { %114 = sbr.rel (%p111_p5) target bundleno = 407 (0x197), region = 24  ;;  %s627_s5 = sshll.u32 (!%p111_p5), %s116_s3, 4 }
  0x38   : > { %s117_s17 = scalar_lea.sflag (!%p111_p5), [#allocation4], %s116_s3  ;;  %s120_s18 = scalar_lea.vmem (!%p111_p5), [#allocation3], %s627_s5 }
  0x3c   : > { %820 = dma.done.wait (%p1184_p3), %s117_s17, 256  }
  0x3d   : > { %822 = vsyncadd (%p1184_p3), %s117_s17, 4294967040  ;;  %s136_s14 = sand.u32 1, %s833_s7   ;;  %s856_s4 = smov 0.0  }
  0x3e   : > { %p1185_p8 = scmp.eq.s32.totalorder %s903_s13, 0  ;;  %s628_s9 = sshll.u32 %s136_s14, 4 }
  0x3f   : > { %s1001_s16 = scalar_lea.vmem [#allocation6], %s628_s9  ;;  %p630_p1 = scmp.ge.s32.totalorder %s903_s13, 1 }
  0x40   : > { %648 = sst [smem:[#allocation2]] (%p1185_p8), %s856_s4 }
  0x41   : > { %156 = sbr.rel (%p630_p1) target bundleno = 363 (0x16b), region = 36  ;;  %s435_s23 = sld [smem:[#allocation2]] (!%p630_p1) }
  0x46   : > { %v1004_v0 = vld [vmem:[%s120_s18] sm:$0xff]  ;;  %v1006_v1 = vld [vmem:[%s120_s18 + $0x8] sm:$0xff]  ;;  %v167_v2 = vlaneseq  ;;  %v857_v3 = vmov 1983009808   ;;  %vm205_vm0 = vcmask 1041408   ;;  %vm492_vm3 = vcmask 1040384  }
  0x47   : > { %159 = vst [vmem:[%s1001_s16] sm:$0xff] %v1004_v0  ;;  %160 = vst [vmem:[%s1001_s16 + $0x8] sm:$0xff] %v1006_v1  ;;  %v165_v4 = vunpack.c.l.s4 %v857_v3  ;;  %v163_v6 = vcombine.high %v1004_v0, %v1004_v0  ;;  %v180_v8 = vcombine.high %v1006_v1, %v1006_v1 }
  0x48   : > { %v168_v5 = vshrl.u32 %v167_v2, 7 }
  0x49   : > { %v166_v7 = vunpack.c.0.s8 %v165_v4 }
  0x4b   : > { %v1016_v9 = vsub.s32 %v166_v7, %v168_v5 }
  0x4d   : > { %v170_v10 = vrot.slane %v1004_v0, %v1016_v9  ;;  %v177_v11 = vrot.slane %v163_v6, %v1016_v9  ;;  %v187_v12 = vrot.slane %v1006_v1, %v1016_v9  ;;  %v194_v13 = vrot.slane %v180_v8, %v1016_v9 }
  0x4f   : > { %v178_v14 = vcombine.high %v170_v10, %v170_v10  ;;  %v179_v15 = vcombine.high %v177_v11, %v177_v11  ;;  %v195_v16 = vcombine.high %v187_v12, %v187_v12  ;;  %v196_v17 = vcombine.high %v194_v13, %v194_v13 }
  0x50   : > { %v206_v18 = vsel %vm205_vm0, %v170_v10, 0.0  ;;  %v220_v19 = vsel %vm205_vm0, %v177_v11, 0.0  ;;  %v234_v20 = vsel %vm205_vm0, %v187_v12, 0.0  ;;  %v248_v21 = vsel %vm205_vm0, %v194_v13, 0.0 }
  0x51   : > { %v207_v22 = vrot.slane %v206_v18, 4  ;;  %v213_v23 = vsel %vm205_vm0, %v178_v14, 0.0  ;;  %v221_v24 = vrot.slane %v220_v19, 4  ;;  %v227_v25 = vsel %vm205_vm0, %v179_v15, 0.0 }
  0x52   : > { %v214_v26 = vrot.slane %v213_v23, 4  ;;  %v228_v27 = vrot.slane %v227_v25, 4  ;;  %v235_v28 = vrot.slane %v234_v20, 4  ;;  %v241_v29 = vsel %vm205_vm0, %v195_v16, 0.0 }
  0x53   : > { %v208_v30 = vadd.f32 %v207_v22, %v206_v18  ;;  %v222_v31 = vadd.f32 %v221_v24, %v220_v19  ;;  %v242_v32 = vrot.slane %v241_v29, 4  ;;  %v249_v33 = vrot.slane %v248_v21, 4 }
  0x54   : > { %v215_v34 = vadd.f32 %v214_v26, %v213_v23  ;;  %v229_v35 = vadd.f32 %v228_v27, %v227_v25  ;;  %v236_v36 = vadd.f32 %v235_v28, %v234_v20  ;;  %v255_v37 = vsel %vm205_vm0, %v196_v17, 0.0 }
  0x55   : > { %v209_v38 = vrot.slane %v208_v30, 2  ;;  %v223_v39 = vrot.slane %v222_v31, 2  ;;  %v243_v40 = vadd.f32 %v242_v32, %v241_v29  ;;  %v250_v41 = vadd.f32 %v249_v33, %v248_v21 }
  0x56   : > { %v216_v42 = vrot.slane %v215_v34, 2  ;;  %v230_v43 = vrot.slane %v229_v35, 2  ;;  %v237_v44 = vrot.slane %v236_v36, 2  ;;  %v256_v45 = vrot.slane %v255_v37, 4 }
  0x57   : > { %v210_v46 = vadd.f32 %v209_v38, %v208_v30  ;;  %v224_v47 = vadd.f32 %v223_v39, %v222_v31  ;;  %v244_v48 = vrot.slane %v243_v40, 2  ;;  %v251_v49 = vrot.slane %v250_v41, 2 }
  0x58   : > { %v217_v50 = vadd.f32 %v216_v42, %v215_v34  ;;  %v231_v51 = vadd.f32 %v230_v43, %v229_v35  ;;  %v238_v52 = vadd.f32 %v237_v44, %v236_v36  ;;  %v257_v53 = vadd.f32 %v256_v45, %v255_v37 }
  0x59   : > { %v211_v54 = vrot.slane %v210_v46, 1  ;;  %v225_v55 = vrot.slane %v224_v47, 1  ;;  %v245_v56 = vadd.f32 %v244_v48, %v243_v40  ;;  %v252_v57 = vadd.f32 %v251_v49, %v250_v41 }
  0x5a   : > { %v218_v58 = vrot.slane %v217_v50, 1  ;;  %v232_v59 = vrot.slane %v231_v51, 1  ;;  %v239_v60 = vrot.slane %v238_v52, 1  ;;  %v258_v61 = vrot.slane %v257_v53, 2 }
  0x5b   : > { %v212_v62 = vadd.f32 %v211_v54, %v210_v46  ;;  %v226_v63 = vadd.f32 %v225_v55, %v224_v47  ;;  %v246_v2 = vrot.slane %v245_v56, 1  ;;  %v253_v3 = vrot.slane %v252_v57, 1 }
  0x5c   : > { %v219_v4 = vadd.f32 %v218_v58, %v217_v50  ;;  %v233_v5 = vadd.f32 %v232_v59, %v231_v51  ;;  %v240_v6 = vadd.f32 %v239_v60, %v238_v52  ;;  %v259_v7 = vadd.f32 %v258_v61, %v257_v53 }
  0x5d   : > { %v247_v8 = vadd.f32 %v246_v2, %v245_v56  ;;  %v254_v10 = vadd.f32 %v253_v3, %v252_v57  ;;  %v263_v11 = vmul.f32 0.5, %v212_v62  ;;  %v265_v12 = vmul.f32 0.5, %v226_v63 }
  0x5e   : > { %v260_v13 = vrot.slane %v259_v7, 1  ;;  %v264_v14 = vmul.f32 0.5, %v219_v4  ;;  %v266_v15 = vmul.f32 0.5, %v233_v5  ;;  %v267_v16 = vmul.f32 0.5, %v240_v6 }
  0x5f   : > { %v268_v17 = vmul.f32 0.5, %v247_v8  ;;  %v269_v19 = vmul.f32 0.5, %v254_v10 }
  0x60   : > { %v261_v18 = vadd.f32 %v260_v13, %v259_v7  ;;  %v279_v20 = vcombine.low %v263_v11, %v264_v14  ;;  %v280_v21 = vcombine.low %v265_v12, %v266_v15 }
  0x61   : > { %v296_v22 = vcombine.low %v267_v16, %v268_v17 }
  0x62   : > { %v270_v23 = vmul.f32 0.5, %v261_v18  ;;  %v287_v24 = vrot.slane %v279_v20, %v1016_v9  ;;  %v294_v25 = vrot.slane %v280_v21, %v1016_v9 }
  0x63   : > { %v304_v28 = vrot.slane %v296_v22, %v1016_v9 }
  0x64   : > { %v295_v26 = vcombine.low %v287_v24, %v294_v25  ;;  %v297_v27 = vcombine.low %v269_v19, %v270_v23 }
  0x66   : > { %v311_v29 = vrot.slane %v297_v27, %v1016_v9  ;;  %v315_v30 = vsub.f32 %v1004_v0, %v295_v26 }
  0x68   : > { %v312_v31 = vcombine.low %v304_v28, %v311_v29  ;;  %v317_v32 = vmul.f32 %v315_v30, %v315_v30 }
  0x6a   : > { %v316_v33 = vsub.f32 %v1006_v1, %v312_v31  ;;  %v321_v34 = vcombine.high %v317_v32, %v317_v32  ;;  %v328_v35 = vrot.slane %v317_v32, %v1016_v9 }
  0x6c   : > { %v318_v36 = vmul.f32 %v316_v33, %v316_v33  ;;  %v335_v37 = vrot.slane %v321_v34, %v1016_v9  ;;  %v336_v38 = vcombine.high %v328_v35, %v328_v35  ;;  %v363_v39 = vsel %vm205_vm0, %v328_v35, 0.0 }
  0x6d   : > { %v364_v40 = vrot.slane %v363_v39, 4 }
  0x6e   : > { %v337_v41 = vcombine.high %v335_v37, %v335_v37  ;;  %v338_v42 = vcombine.high %v318_v36, %v318_v36  ;;  %v345_v43 = vrot.slane %v318_v36, %v1016_v9  ;;  %v370_v0 = vsel %vm205_vm0, %v336_v38, 0.0 }
  0x6f   : > { %v365_v44 = vadd.f32 %v364_v40, %v363_v39  ;;  %v371_v45 = vrot.slane %v370_v0, 4  ;;  %v377_v1 = vsel %vm205_vm0, %v335_v37, 0.0 }
  0x70   : > { %v352_v46 = vrot.slane %v338_v42, %v1016_v9  ;;  %v353_v47 = vcombine.high %v345_v43, %v345_v43  ;;  %v378_v48 = vrot.slane %v377_v1, 4  ;;  %v384_v49 = vsel %vm205_vm0, %v337_v41, 0.0 }
  0x71   : > { %v366_v50 = vrot.slane %v365_v44, 2  ;;  %v372_v51 = vadd.f32 %v371_v45, %v370_v0  ;;  %v385_v52 = vrot.slane %v384_v49, 4  ;;  %v391_v53 = vsel %vm205_vm0, %v345_v43, 0.0 }
  0x72   : > { %v354_v54 = vcombine.high %v352_v46, %v352_v46  ;;  %v379_v55 = vadd.f32 %v378_v48, %v377_v1  ;;  %v392_v56 = vrot.slane %v391_v53, 4  ;;  %v398_v57 = vsel %vm205_vm0, %v353_v47, 0.0 }
  0x73   : > { %v367_v58 = vadd.f32 %v366_v50, %v365_v44  ;;  %v373_v59 = vrot.slane %v372_v51, 2  ;;  %v386_v60 = vadd.f32 %v385_v52, %v384_v49  ;;  %v399_v61 = vrot.slane %v398_v57, 4 }
  0x74   : > { %v380_v62 = vrot.slane %v379_v55, 2  ;;  %v393_v9 = vadd.f32 %v392_v56, %v391_v53  ;;  %v405_v63 = vsel %vm205_vm0, %v352_v46, 0.0  ;;  %v412_v2 = vsel %vm205_vm0, %v354_v54, 0.0 }
  0x75   : > { %v368_v3 = vrot.slane %v367_v58, 1  ;;  %v374_v4 = vadd.f32 %v373_v59, %v372_v51  ;;  %v387_v5 = vrot.slane %v386_v60, 2  ;;  %v400_v6 = vadd.f32 %v399_v61, %v398_v57 }
  0x76   : > { %v381_v7 = vadd.f32 %v380_v62, %v379_v55  ;;  %v394_v8 = vrot.slane %v393_v9, 2  ;;  %v406_v10 = vrot.slane %v405_v63, 4  ;;  %v413_v11 = vrot.slane %v412_v2, 4 }
  0x77   : > { %v369_v12 = vadd.f32 %v368_v3, %v367_v58  ;;  %v375_v13 = vrot.slane %v374_v4, 1  ;;  %v388_v14 = vadd.f32 %v387_v5, %v386_v60  ;;  %v401_v15 = vrot.slane %v400_v6, 2 }
  0x78   : > { %v382_v16 = vrot.slane %v381_v7, 1  ;;  %v395_v17 = vadd.f32 %v394_v8, %v393_v9  ;;  %v407_v18 = vadd.f32 %v406_v10, %v405_v63  ;;  %v414_v19 = vadd.f32 %v413_v11, %v412_v2 }
  0x79   : > { %v376_v20 = vadd.f32 %v375_v13, %v374_v4  ;;  %v389_v21 = vrot.slane %v388_v14, 1  ;;  %v402_v22 = vadd.f32 %v401_v15, %v400_v6  ;;  %v419_v23 = vmul.f32 0.5, %v369_v12 }
  0x7a   : > { %v383_v24 = vadd.f32 %v382_v16, %v381_v7  ;;  %v396_v25 = vrot.slane %v395_v17, 1  ;;  %v408_v26 = vrot.slane %v407_v18, 2  ;;  %v415_v27 = vrot.slane %v414_v19, 2 }
  0x7b   : > { %v390_v28 = vadd.f32 %v389_v21, %v388_v14  ;;  %v403_v29 = vrot.slane %v402_v22, 1  ;;  %v420_v30 = vmul.f32 0.5, %v376_v20  ;;  %v427_v31 = vadd.f32 1e-08, %v419_v23 }
  0x7c   : > { %v397_v32 = vadd.f32 %v396_v25, %v395_v17  ;;  %v409_v33 = vadd.f32 %v408_v26, %v407_v18  ;;  %v416_v34 = vadd.f32 %v415_v27, %v414_v19  ;;  %v421_v35 = vmul.f32 0.5, %v383_v24 }
  0x7d   : > { %v404_v36 = vadd.f32 %v403_v29, %v402_v22  ;;  %v422_v37 = vmul.f32 0.5, %v390_v28  ;;  %v428_v38 = vadd.f32 1e-08, %v420_v30  ;;  %721 = vrsqrt.f32 %v427_v31 }
  0x7e   : > { %v410_v39 = vrot.slane %v409_v33, 1  ;;  %v417_v40 = vrot.slane %v416_v34, 1  ;;  %v423_v41 = vmul.f32 0.5, %v397_v32  ;;  %v429_v42 = vadd.f32 1e-08, %v421_v35 }
  0x7f   : > { %v424_v43 = vmul.f32 0.5, %v404_v36  ;;  %v430_v0 = vadd.f32 1e-08, %v422_v37  ;;  %723 = vrsqrt.f32 %v428_v38  ;;  %vm438_vm1 = vcmp.eq.f32.partialorder %v427_v31, inf }
  0x80   : > { %v411_v44 = vadd.f32 %v410_v39, %v409_v33  ;;  %v418_v45 = vadd.f32 %v417_v40, %v416_v34  ;;  %v1050_v1 = vadd.f32 1e-08, %v423_v41  ;;  %725 = vrsqrt.f32 %v429_v42 }
  0x81   : > { %v1052_v48 = vadd.f32 1e-08, %v424_v43  ;;  %727 = vrsqrt.f32 %v430_v0  ;;  %v441_v52 = vand.u32 2147483648, %v427_v31  ;;  %vm440_vm2 = vcmp.eq.f32.partialorder %v427_v31, 0.0 }
  0x82   : > { %v425_v46 = vmul.f32 0.5, %v411_v44  ;;  %v426_v47 = vmul.f32 0.5, %v418_v45  ;;  %729 = vrsqrt.f32 %v1050_v1  ;;  %vm445_vm4 = vcmp.eq.f32.partialorder %v428_v38, inf }
  0x83   : > { %731 = vrsqrt.f32 %v1052_v48  ;;  %vm447_vm5 = vcmp.eq.f32.partialorder %v428_v38, 0.0  ;;  %v448_v54 = vand.u32 2147483648, %v428_v38  ;;  %vm452_vm6 = vcmp.eq.f32.partialorder %v429_v42, inf }
  0x84   : > { %v1054_v49 = vadd.f32 1e-08, %v425_v46  ;;  %v1056_v50 = vadd.f32 1e-08, %v426_v47  ;;  %vm454_vm7 = vcmp.eq.f32.partialorder %v429_v42, 0.0  ;;  %v455_v56 = vand.u32 2147483648, %v429_v42 }
  0x85   : > { %vm459_vm8 = vcmp.eq.f32.partialorder %v430_v0, inf  ;;  %vm461_vm9 = vcmp.eq.f32.partialorder %v430_v0, 0.0  ;;  %v462_v59 = vand.u32 2147483648, %v430_v0  ;;  %vm466_vm10 = vcmp.eq.f32.partialorder %v1050_v1, inf }
  0x86   : > { %733 = vrsqrt.f32 %v1054_v49  ;;  %vm468_vm11 = vcmp.eq.f32.partialorder %v1050_v1, 0.0  ;;  %v469_v62 = vand.u32 2147483648, %v1050_v1  ;;  %vm473_vm12 = vcmp.eq.f32.partialorder %v1052_v48, inf }
  0x87   : > { %735 = vrsqrt.f32 %v1056_v50  ;;  %vm475_vm13 = vcmp.eq.f32.partialorder %v1052_v48, 0.0  ;;  %v476_v2 = vand.u32 2147483648, %v1052_v48  ;;  %vm480_vm14 = vcmp.eq.f32.partialorder %v1054_v49, inf }
  0x88   : > { %vm482_vm15 = vcmp.eq.f32.partialorder %v1054_v49, 0.0  ;;  %v483_v10 = vand.u32 2147483648, %v1054_v49  ;;  %vm487_vm0 = vcmp.eq.f32.partialorder %v1056_v50, inf  ;;  %v490_v24 = vand.u32 2147483648, %v1056_v50 }
  0x8a   : > { %v722_v51 = vpop.eup %721 }
  0x8b   : > { %v437_v53 = vmul.f32 %v722_v51, %v427_v31 }
  0x8c   : > { %v724_v57 = vpop.eup %723 }
  0x8d   : > { %v439_v55 = vsel %vm438_vm1, %v427_v31, %v437_v53  ;;  %v726_v60 = vpop.eup %725  ;;  %v444_v61 = vmul.f32 %v724_v57, %v428_v38  ;;  %vm489_vm1 = vcmp.eq.f32.partialorder %v1056_v50, 0.0 }
  0x8e   : > { %v442_v58 = vsel %vm440_vm2, %v441_v52, %v439_v55  ;;  %v728_v9 = vpop.eup %727  ;;  %v451_v63 = vmul.f32 %v726_v60, %v429_v42 }
  0x8f   : > { %v446_v3 = vsel %vm445_vm4, %v428_v38, %v444_v61  ;;  %v458_v4 = vmul.f32 %v728_v9, %v430_v0  ;;  %v493_v5 = vsel %vm492_vm3, %v442_v58, 0.0  ;;  %v730_v6 = vpop.eup %729 }
  0x90   : > { %v449_v7 = vsel %vm447_vm5, %v448_v54, %v446_v3  ;;  %v453_v8 = vsel %vm452_vm6, %v429_v42, %v451_v63  ;;  %v732_v11 = vpop.eup %731  ;;  %v465_v14 = vmul.f32 %v730_v6, %v1050_v1 }
  0x91   : > { %v456_v12 = vsel %vm454_vm7, %v455_v56, %v453_v8  ;;  %v460_v13 = vsel %vm459_vm8, %v430_v0, %v458_v4  ;;  %v494_v15 = vsel %vm492_vm3, %v449_v7, 0.0  ;;  %v472_v18 = vmul.f32 %v732_v11, %v1052_v48 }
  0x92   : > { %v463_v17 = vsel %vm461_vm9, %v462_v59, %v460_v13  ;;  %v495_v19 = vadd.f32 %v494_v15, %v493_v5  ;;  %v496_v20 = vsel %vm492_vm3, %v456_v12, 0.0  ;;  %v467_v22 = vsel %vm466_vm10, %v1050_v1, %v465_v14 }
  0x93   : > { %v734_v16 = vpop.eup %733  ;;  %v498_v25 = vsel %vm492_vm3, %v463_v17, 0.0  ;;  %v470_v26 = vsel %vm468_vm11, %v469_v62, %v467_v22  ;;  %v474_v27 = vsel %vm473_vm12, %v1052_v48, %v472_v18 }
  0x94   : > { %v736_v21 = vpop.eup %735  ;;  %v479_v23 = vmul.f32 %v734_v16, %v1054_v49  ;;  %v497_v29 = vadd.f32 %v496_v20, %v495_v19  ;;  %v477_v30 = vsel %vm475_vm13, %v476_v2, %v474_v27  ;;  %v500_v32 = vsel %vm492_vm3, %v470_v26, 0.0 }
  0x95   : > { %v486_v28 = vmul.f32 %v736_v21, %v1056_v50  ;;  %v502_v36 = vsel %vm492_vm3, %v477_v30, 0.0 }
  0x96   : > { %v481_v31 = vsel %vm480_vm14, %v1054_v49, %v479_v23  ;;  %v499_v35 = vadd.f32 %v498_v25, %v497_v29 }
  0x97   : > { %v484_v33 = vsel %vm482_vm15, %v483_v10, %v481_v31  ;;  %v488_v34 = vsel %vm487_vm0, %v1056_v50, %v486_v28 }
  0x98   : > { %v491_v37 = vsel %vm489_vm1, %v490_v24, %v488_v34  ;;  %v501_v38 = vadd.f32 %v500_v32, %v499_v35  ;;  %v504_v39 = vsel %vm492_vm3, %v484_v33, 0.0 }
  0x99   : > { %v506_v41 = vsel %vm492_vm3, %v491_v37, 0.0 }
  0x9a   : > { %v503_v40 = vadd.f32 %v502_v36, %v501_v38 }
  0x9c   : > { %v505_v42 = vadd.f32 %v504_v39, %v503_v40 }
  0x9e   : > { %v507_v43 = vadd.f32 %v506_v41, %v505_v42 }
  0xa0   : > { %508 = vadd.xlane.f32.xlu0 %v507_v43 }
 0x129   : > { %v509_v0 = vpop.xlane.xlu0 %508 }
 0x12a   : > { %v510_v44 = vrot.slane %v509_v0, 4 }
 0x12c   : > { %v511_v45 = vadd.f32 %v510_v44, %v509_v0 }
 0x12e   : > { %v512_v1 = vrot.slane %v511_v45, 2 }
 0x130   : > { %v513_v46 = vadd.f32 %v512_v1, %v511_v45 }
 0x132   : > { %v514_v47 = vrot.slane %v513_v46, 1 }
 0x134   : > { %v515_v48 = vadd.f32 %v514_v47, %v513_v46 }
 0x136   : > { %643 = vpush %v515_v48 }
 0x167   : > { %s644_s19 = spop %643 }
 0x168   : > { %s517_s21 = sadd.f32 %s644_s19, %s435_s23 }
 0x16a   : > { %519 = sst [smem:[#allocation2]] %s517_s21 }
 0x16b PF: > { %p631_p4 = scmp.lt.s32.totalorder %s903_s13, 1 }
 0x16c   : > { %s524_s24 = sld [smem:[#allocation2]] (!%p631_p4) }
 0x16d   : > { %523 = sbr.rel (%p631_p4) target bundleno = 374 (0x176), region = 40 }
 0x172   : > { %s525_s20 = smul.f32 0.0009765625, %s524_s24 }
 0x174   : > { %v526_v49 = vstv %s525_s20 }
 0x175   : > { %527 = vst [vmem:[%s1001_s16] sm:$0xff] %v526_v49  ;;  %528 = vst [vmem:[%s1001_s16 + $0x8] sm:$0xff] %v526_v49 }
 0x176 PF: > { %s1115_s28 = scalar_lea.sflag [#allocation5], %s136_s14  ;;  %p1186_p9 = scmp.ne.s32.totalorder %s1179_s26, 0 }
 0x177   : > { %s633_s29 = sshll.u32 (%p1186_p9), %s903_s13, 3 }
 0x178   : > { %536 = sbr.rel (!%p1186_p9) target bundleno = 407 (0x197), region = 44  ;;  %s538_s30 = ssub.s32 (%p1186_p9), 10, %s633_s29 }
 0x179   : > { %p539_p11 = scmp.lt.s32.totalorder (%p1186_p9), %s538_s30, 8 }
 0x17d   : > { %s1197_s30 = smov (!%p539_p11, %s538_s30), 8 }
 0x17e   : > { %s1120_s2 = sshll.u32 %s1197_s30, 5 }
 0x17f   : > { %s543_s3 = ssub.s32 256, %s1120_s2 }
 0x180   : > { %544 = vsyncadd %s1115_s28, %s543_s3  ;;  %p635_p13 = scmp.ne.s32.totalorder %s1120_s2, 0  ;;  %s642_s5 = sshll.u32 %s903_s13, 8 }
 0x181   : > { %s547_s18 = scalar_lea.hbm %s1174_s1, %s642_s5  ;;  %s550_s14 = sshll.u32 %s1001_s16, 4  ;;  %s551_s14 = int_to_ptr.vmem [resolvable:$true] %s550_s14 }
 0x182   : > { %s765_s4 = scalar_lea.vmem %s551_s14, %s1120_s2  ;;  %s858_s9 = smov [#allocation6]  }
 0x183   : > { %p766_p6 = scmp.ne.s32.totalorder %s551_s14, %s765_s4  ;;  %s769_s23 = sshll.u32 %s858_s9, 4  ;;  %s770_s23 = int_to_ptr.vmem [resolvable:$false] %s769_s23 }
 0x184   : > { %s771_s19 = scalar_lea.vmem %s770_s23, 512  ;;  %p772_p12 = scmp.lt.s32.totalorder %s551_s14, %s770_s23 }
 0x185   : > { %p767_p2 = pnand %p766_p6, %p635_p13  ;;  %p773_p7 = scmp.lt.s32.totalorder %s771_s19, %s765_s4 }
 0x187   : > { %p768_p10 = pneg %p767_p2  ;;  %p774_p0 = por %p773_p7, %p772_p12 }
 0x189   : > { %p775_p5 = pnand %p774_p0, %p768_p10 }
 0x18b   : > { %778 = shalt.err (!%p775_p5)
}
 0x18c   : > { %s779_s13 = scalar_lea.hbm %s547_s18, %s1120_s2  ;;  %s783_s24 = scalar_lea.hbm %s1174_s1, 320 }
 0x18d   : > { %p780_p3 = scmp.ne.s32.totalorder %s547_s18, %s779_s13  ;;  %p784_p4 = scmp.lt.s32.totalorder %s547_s18, %s1174_s1 }
 0x18e   : > { %p785_p9 = scmp.lt.s32.totalorder %s783_s24, %s779_s13 }
 0x18f   : > { %p781_p8 = pnand %p780_p3, %p635_p13 }
 0x190   : > { %p786_p11 = por %p785_p9, %p784_p4 }
 0x191   : > { %p782_p1 = pneg %p781_p8 }
 0x193   : > { %p787_p6 = pnand %p786_p11, %p782_p1 }
 0x195   : > { %790 = shalt.err (!%p787_p6)
}
 0x196   : > { %553 = dma.vmem_to_hbm [thread:$0]  (%p635_p13), %s551_s14, %s1120_s2, %s547_s18, %s1115_s28  }
 0x197 PF: > { %s562_s30 = sand.u32 1, %s829_s6   ;;  %p1187_p2 = scmp.ne.s32.totalorder %s1180_s27, 0 }
 0x198   : > { %p1188_p10 = scmp.ge.s32.totalorder %s853_s12, 2  ;;  %s563_s3 = scalar_lea.sflag [#allocation5], %s562_s30 }
 0x19a   : > { %p655_p12 = pnand %p1188_p10, %p1187_p2 }
 0x19c   : > { %p656_p7 = pneg %p655_p12 }
 0x19e   : > { %824 = dma.done.wait (%p656_p7), %s563_s3, 256  }
 0x19f   : > { %826 = vsyncadd (%p656_p7), %s563_s3, 4294967040  ;;  %p14_p13 = scmp.ge.s32.totalorder %s907_s15, 4   ;;  %s1189_s6 = smov %s833_s7 }
 0x1a0   : > { %s1190_s7 = smov %s837_s8  ;;  %s1191_s8 = smov %s938_s25 }
 0x1a1   : > { %s1192_s9 = smov %s845_s10  ;;  %s1193_s10 = smov %s849_s11 }
 0x1a2   : > { %s1194_s11 = smov %s926_s22  ;;  %s1195_s12 = smov %s907_s15 }
 0x1a3   :  { %16 = sbr.rel (!%p14_p13) target bundleno = 7 (0x7), region = 83 }
 0x1a8   :  { %568 = vsyncpa [#allocation4], 1 }
 0x1a9   :  { %570 = vsyncpa [#allocation4 + $0x1], 1 }
 0x1aa   :  { %571 = vsyncpa [#allocation5], 1 }
 0x1ab   :  { %573 = vsyncpa [#allocation5 + $0x1], 1 }

</bundles_post_ra>
